<compile_context>
chip_gen: v5e
topology: v5e:2x2
jax: 0.10.0
libtpu: 0.0.40
codegen_flags: <defaults>
</compile_context>

<pallas_src>
import functools

import jax
import jax.numpy as jnp
import numpy as np
from jax import lax
from jax.experimental import pallas as pl
from jax.experimental.pallas import tpu as pltpu


def _cdims(lhs_dim, rhs_dim):
    """dot_general dimension_numbers contracting lhs_dim with rhs_dim, no batch."""
    return (((lhs_dim,), (rhs_dim,)), ((), ()))


def ctbae_loss_kernel(x_ref, w1_ref, b1_ref, w2_ref, b2_ref, proj_ref, out_ref,
                      *, contractive_weight, tangent_bundle_weight,
                      inv_b, inv_bd):
    b = pl.program_id(0)
    f32 = jnp.float32

    x = x_ref[...]        # (TB, D)
    w1 = w1_ref[...]      # (d, D)
    b1 = b1_ref[...]      # (1, d)
    w2 = w2_ref[...]      # (D, d)
    b2 = b2_ref[...]      # (1, D)

    tb, D = x.shape
    d = w1.shape[0]

    # ---- forward pass (dot_general: contract on weight dim 1 / 1, no transposes)
    pre = lax.dot_general(x, w1, _cdims(1, 1), preferred_element_type=f32) + b1   # (TB, d)
    z = jnp.tanh(pre)
    x_hat = lax.dot_general(z, w2, _cdims(1, 1), preferred_element_type=f32) + b2  # (TB, D)

    diff = x_hat - x
    mse_part = jnp.sum(diff * diff)

    # tanh' factor: dpi_b = diag(s_b) @ W1
    s = 1.0 - z * z                                                                # (TB, d)

    # ---- contractive term: ||dpi_b||_F^2 = sum_j s_bj^2 * ||W1[j,:]||^2
    rowsq = jnp.sum(w1 * w1, axis=1, keepdims=True)                                # (d, 1)
    contr_part = jnp.sum(
        lax.dot_general(s * s, rowsq, _cdims(1, 0), preferred_element_type=f32))

    # ---- tangent-bundle term: ||P_b - proj_b||^2 = quad - 2*cross + ||proj_b||^2
    # quad_b = s_b^T (G1 o G2) s_b, with G1 = W1 W1^T, G2 = W2^T W2 (both (d, d))
    G1 = lax.dot_general(w1, w1, _cdims(1, 1), preferred_element_type=f32)         # (d, d)
    G2 = lax.dot_general(w2, w2, _cdims(0, 0), preferred_element_type=f32)         # (d, d)
    H = G1 * G2
    sH = lax.dot_general(s, H, _cdims(1, 0), preferred_element_type=f32)           # (TB, d)
    quad = jnp.sum(sH * s)

    # cross_b = <P_b, proj_b> = sum_j s_bj * sum_i W2[i,j] * (proj_b @ W1^T)[i,j]
    # Single lane-flattened matmul over the whole tile: (TB*D, D) x (D, d).
    proj2 = proj_ref[...].reshape(tb * D, D)                                       # (TB*D, D)
    V = lax.dot_general(proj2, w1, _cdims(1, 1), preferred_element_type=f32)       # (TB*D, d)
    M = jnp.sum(V.reshape(tb, D, d) * w2[None, :, :], axis=1)                      # (TB, d)
    cross = jnp.sum(M * s)

    proj_sq = jnp.sum(proj2 * proj2)
    tang_part = quad - 2.0 * cross + proj_sq

    tile_total = (mse_part * inv_bd
                  + contractive_weight * contr_part * inv_b
                  + tangent_bundle_weight * tang_part * inv_b)

    @pl.when(b == 0)
    def _():
        out_ref[0, 0] = 0.0

    out_ref[0, 0] += tile_total


def _pick_batch_tile(B, D, requested=None):
    """Largest batch tile <= requested (or ~2 MiB of proj) that divides B and
    satisfies the sublane rule for the (TB, D) x-tile (TB % 8 == 0 or TB == B)."""
    if requested is not None:
        tb = max(1, min(int(requested), B))
    else:
        tb = max(1, min(B, (2 << 20) // max(1, D * D * 4)))
    for cand in range(tb, 0, -1):
        if B % cand == 0 and (cand % 8 == 0 or cand == B):
            return cand
    return B


def ctbae_loss(x, w1, b1, w2, b2, orthog_proj,
               contractive_weight=1.0, tangent_bundle_weight=1.0, block_b=None):
    x = x.astype(jnp.float32)
    w1 = w1.astype(jnp.float32)
    w2 = w2.astype(jnp.float32)
    orthog_proj = orthog_proj.astype(jnp.float32)

    B, D = x.shape
    d = w1.shape[0]
    b1 = b1.reshape(1, d).astype(jnp.float32)
    b2 = b2.reshape(1, D).astype(jnp.float32)

    tb = _pick_batch_tile(B, D, block_b)
    nb = B // tb

    kernel = functools.partial(
        ctbae_loss_kernel,
        contractive_weight=float(contractive_weight),
        tangent_bundle_weight=float(tangent_bundle_weight),
        inv_b=1.0 / B,
        inv_bd=1.0 / (B * D),
    )

    out = pl.pallas_call(
        kernel,
        out_shape=jax.ShapeDtypeStruct((1, 1), jnp.float32),
        grid_spec=pltpu.PrefetchScalarGridSpec(
            num_scalar_prefetch=0,
            grid=(nb,),
            in_specs=[
                pl.BlockSpec((tb, D), lambda b: (b, 0)),        # x        (streamed)
                pl.BlockSpec((d, D), lambda b: (0, 0)),         # W1       (resident)
                pl.BlockSpec((1, d), lambda b: (0, 0)),         # b1       (resident)
                pl.BlockSpec((D, d), lambda b: (0, 0)),         # W2       (resident)
                pl.BlockSpec((1, D), lambda b: (0, 0)),         # b2       (resident)
                pl.BlockSpec((tb, D, D), lambda b: (b, 0, 0)),  # proj     (streamed)
            ],
            out_specs=pl.BlockSpec(memory_space=pltpu.MemorySpace.SMEM),
        ),
        compiler_params=pltpu.CompilerParams(
            dimension_semantics=("arbitrary",),      # output accumulates over batch tiles
            vmem_limit_bytes=32 * 1024 * 1024,
        ),
    )(x, w1, b1, w2, b2, orthog_proj)
    return out[0, 0]


def ctbae_loss_ref(x, w1, b1, w2, b2, proj, cw, tw):
    """Pure-JAX reference mirroring the PyTorch CTBAELoss semantics (direct form)."""
    z = jnp.tanh(x @ w1.T + b1)
    x_hat = z @ w2.T + b2
    dpi = (1.0 - z * z)[:, :, None] * w1[None, :, :]
    P = jnp.einsum('ij,bjk->bik', w2, dpi)
    mse = jnp.mean((x_hat - x) ** 2)
    contractive = jnp.mean(jnp.sum(dpi ** 2, axis=(1, 2)))
    tangent = jnp.mean(jnp.sum((P - proj) ** 2, axis=(1, 2)))
    return mse + cw * contractive + tw * tangent


if __name__ == "__main__":
    B, D, d = 32, 16, 4
    contractive_weight = 1.0
    tangent_bundle_weight = 1.0

    key = jax.random.PRNGKey(0)
    kx, kp, kw1, kb1, kw2, kb2 = jax.random.split(key, 6)

    x = jax.random.normal(kx, (B, D), dtype=jnp.float32)
    orthog_proj = jax.random.normal(kp, (B, D, D), dtype=jnp.float32) * 0.1

    # Deterministic synthetic CTBAE parameters.
    w1 = jax.random.normal(kw1, (d, D), dtype=jnp.float32) * 0.3   # encoder weight
    b1 = jax.random.normal(kb1, (d,), dtype=jnp.float32) * 0.1     # encoder bias
    w2 = jax.random.normal(kw2, (D, d), dtype=jnp.float32) * 0.3   # decoder weight
    b2 = jax.random.normal(kb2, (D,), dtype=jnp.float32) * 0.1     # decoder bias

    # block_b=8 -> grid of 4 batch tiles, exercising the streamed/accumulating path.
    loss = ctbae_loss(x, w1, b1, w2, b2, orthog_proj,
                      contractive_weight=contractive_weight,
                      tangent_bundle_weight=tangent_bundle_weight,
                      block_b=8)
    loss = jax.block_until_ready(loss)

    ref = ctbae_loss_ref(x, w1, b1, w2, b2, orthog_proj,
                         contractive_weight, tangent_bundle_weight)
    ref = jax.block_until_ready(ref)

    assert np.isfinite(float(loss))
    np.testing.assert_allclose(float(loss), float(ref), rtol=2e-4, atol=1e-4)

    print("KERNEL_OK")
</pallas_src>

<mosaic_0001>
module attributes {stable_mosaic.version = 11 : i64} {
  func.func @ctbae_loss_kernel(%arg0: i32, %arg1: memref<8x16xf32, #tpu.memory_space<vmem>>, %arg2: memref<4x16xf32, #tpu.memory_space<vmem>>, %arg3: memref<1x4xf32, #tpu.memory_space<vmem>>, %arg4: memref<16x4xf32, #tpu.memory_space<vmem>>, %arg5: memref<1x16xf32, #tpu.memory_space<vmem>>, %arg6: memref<8x16x16xf32, #tpu.memory_space<vmem>>, %arg7: memref<1x1xf32, #tpu.memory_space<smem>>) attributes {dimension_semantics = [#tpu.dimension_semantics<arbitrary>], iteration_bounds = array<i64: 4>, scalar_prefetch = 0 : i64, scratch_operands = 0 : i64, tpu.core_type = #tpu.core_type<tc>, window_params = [{transform_indices = @transform_0, window_bounds = array<i64: 8, 16>}, {pipeline_mode = #tpu.pipeline_mode<synchronous>, transform_indices = @transform_1, window_bounds = array<i64: 4, 16>}, {pipeline_mode = #tpu.pipeline_mode<synchronous>, transform_indices = @transform_2, window_bounds = array<i64: 1, 4>}, {pipeline_mode = #tpu.pipeline_mode<synchronous>, transform_indices = @transform_3, window_bounds = array<i64: 16, 4>}, {pipeline_mode = #tpu.pipeline_mode<synchronous>, transform_indices = @transform_4, window_bounds = array<i64: 1, 16>}, {transform_indices = @transform_5, window_bounds = array<i64: 8, 16, 16>}, {transform_indices = @transform_6, window_bounds = array<i64: 1, 1>}]} {
    %c0 = arith.constant 0 : index
    %c0_0 = arith.constant 0 : index
    %0 = vector.load %arg1[%c0, %c0_0] : memref<8x16xf32, #tpu.memory_space<vmem>>, vector<8x16xf32>
    %c0_1 = arith.constant 0 : index
    %c0_2 = arith.constant 0 : index
    %1 = vector.load %arg2[%c0_1, %c0_2] : memref<4x16xf32, #tpu.memory_space<vmem>>, vector<4x16xf32>
    %c0_3 = arith.constant 0 : index
    %c0_4 = arith.constant 0 : index
    %2 = vector.load %arg3[%c0_3, %c0_4] : memref<1x4xf32, #tpu.memory_space<vmem>>, vector<1x4xf32>
    %c0_5 = arith.constant 0 : index
    %c0_6 = arith.constant 0 : index
    %3 = vector.load %arg4[%c0_5, %c0_6] : memref<16x4xf32, #tpu.memory_space<vmem>>, vector<16x4xf32>
    %c0_7 = arith.constant 0 : index
    %c0_8 = arith.constant 0 : index
    %4 = vector.load %arg5[%c0_7, %c0_8] : memref<1x16xf32, #tpu.memory_space<vmem>>, vector<1x16xf32>
    %cst = arith.constant dense<0.000000e+00> : vector<8x4xf32>
    %5 = tpu.matmul %0, %1, %cst {dimension_numbers = #tpu.dot_dimension_numbers<[1], [1], [0], [0], [0, 0, 1, 0], [], []>} : vector<8x16xf32>, vector<4x16xf32>, vector<8x4xf32> -> vector<8x4xf32>
    %6 = vector.broadcast %2 : vector<1x4xf32> to vector<8x4xf32>
    %7 = arith.addf %5, %6 : vector<8x4xf32>
    %8 = math.tanh %7 : vector<8x4xf32>
    %cst_9 = arith.constant dense<0.000000e+00> : vector<8x16xf32>
    %9 = tpu.matmul %8, %3, %cst_9 {dimension_numbers = #tpu.dot_dimension_numbers<[1], [1], [0], [0], [0, 0, 1, 0], [], []>} : vector<8x4xf32>, vector<16x4xf32>, vector<8x16xf32> -> vector<8x16xf32>
    %10 = vector.broadcast %4 : vector<1x16xf32> to vector<8x16xf32>
    %11 = arith.addf %9, %10 : vector<8x16xf32>
    %12 = arith.subf %11, %0 : vector<8x16xf32>
    %13 = arith.mulf %12, %12 : vector<8x16xf32>
    %14 = vector.shape_cast %13 : vector<8x16xf32> to vector<1x8x16xf32>
    %cst_10 = arith.constant dense<0.000000e+00> : vector<1xf32>
    %15 = vector.multi_reduction <add>, %14, %cst_10 [1, 2] : vector<1x8x16xf32> to vector<1xf32>
    %16 = vector.shape_cast %15 : vector<1xf32> to vector<1x1x1xf32>
    %17 = vector.extract %16[0, 0, 0] : f32 from vector<1x1x1xf32>
    %18 = arith.mulf %8, %8 : vector<8x4xf32>
    %cst_11 = arith.constant 1.000000e+00 : f32
    %19 = vector.broadcast %cst_11 : f32 to vector<8x4xf32>
    %20 = arith.subf %19, %18 : vector<8x4xf32>
    %21 = arith.mulf %1, %1 : vector<4x16xf32>
    %cst_12 = arith.constant dense<0.000000e+00> : vector<4xf32>
    %22 = vector.multi_reduction <add>, %21, %cst_12 [1] : vector<4x16xf32> to vector<4xf32>
    %23 = vector.shape_cast %22 : vector<4xf32> to vector<4x1xf32>
    %24 = arith.mulf %20, %20 : vector<8x4xf32>
    %cst_13 = arith.constant dense<0.000000e+00> : vector<8x1xf32>
    %25 = tpu.matmul %24, %23, %cst_13 {dimension_numbers = #tpu.dot_dimension_numbers<[1], [0], [0], [1], [0, 0, 1, 1], [], []>} : vector<8x4xf32>, vector<4x1xf32>, vector<8x1xf32> -> vector<8x1xf32>
    %26 = vector.shape_cast %25 : vector<8x1xf32> to vector<1x8x1xf32>
    %cst_14 = arith.constant dense<0.000000e+00> : vector<1xf32>
    %27 = vector.multi_reduction <add>, %26, %cst_14 [1, 2] : vector<1x8x1xf32> to vector<1xf32>
    %28 = vector.shape_cast %27 : vector<1xf32> to vector<1x1x1xf32>
    %29 = vector.extract %28[0, 0, 0] : f32 from vector<1x1x1xf32>
    %cst_15 = arith.constant dense<0.000000e+00> : vector<4x4xf32>
    %30 = tpu.matmul %1, %1, %cst_15 {dimension_numbers = #tpu.dot_dimension_numbers<[1], [1], [0], [0], [0, 0, 1, 0], [], []>} : vector<4x16xf32>, vector<4x16xf32>, vector<4x4xf32> -> vector<4x4xf32>
    %cst_16 = arith.constant dense<0.000000e+00> : vector<4x4xf32>
    %31 = tpu.matmul %3, %3, %cst_16 {dimension_numbers = #tpu.dot_dimension_numbers<[0], [0], [1], [1], [0, 1, 1, 1], [], []>} : vector<16x4xf32>, vector<16x4xf32>, vector<4x4xf32> -> vector<4x4xf32>
    %32 = arith.mulf %30, %31 : vector<4x4xf32>
    %cst_17 = arith.constant dense<0.000000e+00> : vector<8x4xf32>
    %33 = tpu.matmul %20, %32, %cst_17 {dimension_numbers = #tpu.dot_dimension_numbers<[1], [0], [0], [1], [0, 0, 1, 1], [], []>} : vector<8x4xf32>, vector<4x4xf32>, vector<8x4xf32> -> vector<8x4xf32>
    %34 = arith.mulf %33, %20 : vector<8x4xf32>
    %35 = vector.shape_cast %34 : vector<8x4xf32> to vector<1x8x4xf32>
    %cst_18 = arith.constant dense<0.000000e+00> : vector<1xf32>
    %36 = vector.multi_reduction <add>, %35, %cst_18 [1, 2] : vector<1x8x4xf32> to vector<1xf32>
    %37 = vector.shape_cast %36 : vector<1xf32> to vector<1x1x1xf32>
    %38 = vector.extract %37[0, 0, 0] : f32 from vector<1x1x1xf32>
    %c0_19 = arith.constant 0 : index
    %c0_20 = arith.constant 0 : index
    %c0_21 = arith.constant 0 : index
    %39 = vector.load %arg6[%c0_19, %c0_20, %c0_21] : memref<8x16x16xf32, #tpu.memory_space<vmem>>, vector<8x16x16xf32>
    %40 = vector.shape_cast %39 : vector<8x16x16xf32> to vector<128x16xf32>
    %cst_22 = arith.constant dense<0.000000e+00> : vector<128x4xf32>
    %41 = tpu.matmul %40, %1, %cst_22 {dimension_numbers = #tpu.dot_dimension_numbers<[1], [1], [0], [0], [0, 0, 1, 0], [], []>} : vector<128x16xf32>, vector<4x16xf32>, vector<128x4xf32> -> vector<128x4xf32>
    %42 = vector.shape_cast %41 : vector<128x4xf32> to vector<8x16x4xf32>
    %43 = vector.shape_cast %3 : vector<16x4xf32> to vector<1x16x4xf32>
    %44 = vector.broadcast %43 : vector<1x16x4xf32> to vector<8x16x4xf32>
    %45 = arith.mulf %42, %44 : vector<8x16x4xf32>
    %cst_23 = arith.constant dense<0.000000e+00> : vector<8x4xf32>
    %46 = vector.multi_reduction <add>, %45, %cst_23 [1] : vector<8x16x4xf32> to vector<8x4xf32>
    %47 = arith.mulf %46, %20 : vector<8x4xf32>
    %48 = vector.shape_cast %47 : vector<8x4xf32> to vector<1x8x4xf32>
    %cst_24 = arith.constant dense<0.000000e+00> : vector<1xf32>
    %49 = vector.multi_reduction <add>, %48, %cst_24 [1, 2] : vector<1x8x4xf32> to vector<1xf32>
    %50 = vector.shape_cast %49 : vector<1xf32> to vector<1x1x1xf32>
    %51 = vector.extract %50[0, 0, 0] : f32 from vector<1x1x1xf32>
    %52 = arith.mulf %40, %40 : vector<128x16xf32>
    %53 = vector.shape_cast %52 : vector<128x16xf32> to vector<1x128x16xf32>
    %cst_25 = arith.constant dense<0.000000e+00> : vector<1xf32>
    %54 = vector.multi_reduction <add>, %53, %cst_25 [1, 2] : vector<1x128x16xf32> to vector<1xf32>
    %55 = vector.shape_cast %54 : vector<1xf32> to vector<1x1x1xf32>
    %56 = vector.extract %55[0, 0, 0] : f32 from vector<1x1x1xf32>
    %cst_26 = arith.constant 2.000000e+00 : f32
    %57 = arith.mulf %cst_26, %51 : f32
    %58 = arith.subf %38, %57 : f32
    %59 = arith.addf %58, %56 : f32
    %cst_27 = arith.constant 0.001953125 : f32
    %60 = arith.mulf %17, %cst_27 : f32
    %cst_28 = arith.constant 1.000000e+00 : f32
    %61 = arith.mulf %cst_28, %29 : f32
    %cst_29 = arith.constant 3.125000e-02 : f32
    %62 = arith.mulf %61, %cst_29 : f32
    %63 = arith.addf %60, %62 : f32
    %cst_30 = arith.constant 1.000000e+00 : f32
    %64 = arith.mulf %cst_30, %59 : f32
    %cst_31 = arith.constant 3.125000e-02 : f32
    %65 = arith.mulf %64, %cst_31 : f32
    %66 = arith.addf %63, %65 : f32
    %c0_i32 = arith.constant 0 : i32
    %67 = arith.cmpi eq, %arg0, %c0_i32 : i32
    %68 = arith.extui %67 : i1 to i32
    %c0_i32_32 = arith.constant 0 : i32
    %69 = arith.cmpi ne, %68, %c0_i32_32 : i32
    scf.if %69 {
      %cst_37 = arith.constant 0.000000e+00 : f32
      %c0_38 = arith.constant 0 : index
      %c0_39 = arith.constant 0 : index
      %73 = memref.load %arg7[%c0_38, %c0_39] : memref<1x1xf32, #tpu.memory_space<smem>>
      memref.store %cst_37, %arg7[%c0_38, %c0_39] : memref<1x1xf32, #tpu.memory_space<smem>>
    } else {
    }
    %c0_33 = arith.constant 0 : index
    %c0_34 = arith.constant 0 : index
    %70 = memref.load %arg7[%c0_33, %c0_34] : memref<1x1xf32, #tpu.memory_space<smem>>
    %71 = arith.addf %70, %66 : f32
    %c0_35 = arith.constant 0 : index
    %c0_36 = arith.constant 0 : index
    %72 = memref.load %arg7[%c0_35, %c0_36] : memref<1x1xf32, #tpu.memory_space<smem>>
    memref.store %71, %arg7[%c0_35, %c0_36] : memref<1x1xf32, #tpu.memory_space<smem>>
    return
  }
  func.func @transform_0(%arg0: i32) -> (i32, i32) {
    %c0_i32 = arith.constant 0 : i32
    %c0_i32_0 = arith.constant 0 : i32
    return %arg0, %c0_i32 : i32, i32
  }
  func.func @transform_1(%arg0: i32) -> (i32, i32) {
    %c0_i32 = arith.constant 0 : i32
    %c0_i32_0 = arith.constant 0 : i32
    %c0_i32_1 = arith.constant 0 : i32
    return %c0_i32, %c0_i32_0 : i32, i32
  }
  func.func @transform_2(%arg0: i32) -> (i32, i32) {
    %c0_i32 = arith.constant 0 : i32
    %c0_i32_0 = arith.constant 0 : i32
    %c0_i32_1 = arith.constant 0 : i32
    return %c0_i32, %c0_i32_0 : i32, i32
  }
  func.func @transform_3(%arg0: i32) -> (i32, i32) {
    %c0_i32 = arith.constant 0 : i32
    %c0_i32_0 = arith.constant 0 : i32
    %c0_i32_1 = arith.constant 0 : i32
    return %c0_i32, %c0_i32_0 : i32, i32
  }
  func.func @transform_4(%arg0: i32) -> (i32, i32) {
    %c0_i32 = arith.constant 0 : i32
    %c0_i32_0 = arith.constant 0 : i32
    %c0_i32_1 = arith.constant 0 : i32
    return %c0_i32, %c0_i32_0 : i32, i32
  }
  func.func @transform_5(%arg0: i32) -> (i32, i32, i32) {
    %c0_i32 = arith.constant 0 : i32
    %c0_i32_0 = arith.constant 0 : i32
    %c0_i32_1 = arith.constant 0 : i32
    return %arg0, %c0_i32, %c0_i32_0 : i32, i32, i32
  }
  func.func @transform_6(%arg0: i32) -> (i32, i32) {
    %c0_i32 = arith.constant 0 : i32
    %c0_i32_0 = arith.constant 0 : i32
    %c0_i32_1 = arith.constant 0 : i32
    return %c0_i32, %c0_i32_0 : i32, i32
  }
}

</mosaic_0001>

<bundles_post_ra>
// kernel: tpu_custom_call.1
= control target key start
LH: loop header
LB: loop body
LE: loop exit
PB: predicated region body
PF: predicated region fallthrough
CT: control target
= control target key end

     0   :  { %11 = vsyncpa [#allocation3], 0  ;;  %s1057_s21 = smov 0   ;;  %s1278_s0 = inlined_call_operand.vmem [shape: f32[32,16], index: 0, kind: input, shape index: {}]   ;;  %s1279_s1 = inlined_call_operand.vmem [shape: f32[4,16], index: 1, kind: input, shape index: {}]   ;;  %s1280_s2 = inlined_call_operand.vmem [shape: f32[1,4], index: 2, kind: input, shape index: {}]   ;;  %s1281_s3 = inlined_call_operand.vmem [shape: f32[16,4], index: 3, kind: input, shape index: {}]   ;;  %s1282_s4 = inlined_call_operand.vmem [shape: f32[1,16], index: 4, kind: input, shape index: {}]   ;;  %s1283_s5 = inlined_call_operand.vmem [shape: f32[32,16,16], index: 5, kind: input, shape index: {}]   ;;  %s1284_s6 = inlined_call_operand.hbm [shape: f32[1,1], index: 6, kind: output, shape index: {}]  }
   0x1 LB: > { %s1063_s22 = sadd.s32 4294967295, %s1018_s21   ;;  %p917_p0 = scmp.ge.s32.totalorder %s1018_s21, 1  ;;  %s1018_s21 = sphi %s1057_s21, %s17_s21  }
   0x2   : > { %p219_p1 = scmp.lt.s32.totalorder %s1018_s21, 5 }
   0x4   : > { %p220_p2 = pnand %p917_p0, %p219_p1 }
   0x5   : > { %p249_p3 = scmp.lt.s32.totalorder (!%p220_p2), %s1063_s22, 3  ;;  %s919_s25 = sshll.u32 (!%p220_p2), %s1063_s22, 3 }
   0x6   : > { %223 = sbr.rel (%p220_p2) target bundleno = 730 (0x2da), region = 44  ;;  %p254_p4 = scmp.lt.s32.totalorder (!%p220_p2), %s919_s25, 31 }
   0x7   : > { %p976_p5 = scmp.eq.s32.totalorder (!%p220_p2), %s1063_s22, 0  ;;  %s1020_s19 = smov (!%p220_p2), 0.0  }
   0x8   : > { %s861_s13 = sshll.u32 (!%p220_p2), %s1284_s6, 4  ;;  %p977_p6 = scmp.eq.s32.totalorder (!%p220_p2), %s1063_s22, 3  ;;  %s862_s13 = int_to_ptr.hbm [resolvable:$true] %s861_s13 }
   0x9   : > { %s1021_s16 = smov (!%p220_p2), [#allocation2]  }
   0xb   : > { %v1070_v0 = vld [vmem:[%s1279_s1] sm:$0xf]  ;;  %vm345_vm0 = vcmask 125952   ;;  %vm269_vm1 = vcmask 130048   ;;  %s250_s26 = scalar_select %p249_p3, %s1063_s22, 3  ;;  %v1128_v10 = vld [vmem:[%s1281_s3 + $0x8] sm:$0xff] }
   0xc   : > { %v344_v1 = vmul.f32 %v1070_v0, %v1070_v0  ;;  %922 = vmatpush.xpose.msk.msra.mxu0 %vm269_vm1, %v1070_v0  ;;  %929 = vmatpush.xpose.msk.msra.mxu3 %vm269_vm1, %v1070_v0  ;;  %s1286_s25 = smov (!%p254_p4, %s919_s25), 31  ;;  %v1120_v9 = vld [vmem:[%s1281_s3] sm:$0xff]  ;;  %vm300_vm2 = vcmask 31744   ;;  %vm353_vm3 = vcmask 1043456   ;;  %vm377_vm4 = vcmask 7168   ;;  %971 = sst [smem:[#allocation2]] (%p976_p5), %s1020_s19 }
   0xd   : > { %s918_s27 = sshll.u32 %s250_s26, 3  ;;  %s956_s7 = sshll.u32 %s1286_s25, 4  ;;  %924 = vmatpush.xpose.msk.msra.mxu1 %vm300_vm2, %v1128_v10  ;;  %v990_v12 = vld [vmem:[%s1280_s2] ss:$0 sm:$0xff]  ;;  %vm750_vm5 = vcmask 1041409   ;;  %vm753_vm6 = vcmask 1042434  }
   0xe   : > { %v346_v2 = vsel %vm345_vm0, %v344_v1, 0.0  ;;  %s252_s30 = scalar_lea.vmem %s1278_s0, %s918_s27  ;;  %s1091_s10 = scalar_lea.vmem %s1283_s5, %s956_s7  ;;  %v991_v28 = vld [vmem:[%s1282_s4] ss:$0 sm:$0xff]  ;;  %vm756_vm7 = vcmask 1043459   ;;  %vm759_vm8 = vcmask 1044484   ;;  %vm762_vm9 = vcmask 1045509  }
   0xf   : > { %347 = vadd.xlane.f32.xlu0 %v346_v2  ;;  %930 = vmatmul.msk.f32.vlgmr.msra.gmra.mxu3 %vm269_vm1, %v1070_v0  ;;  %v260_v3 = vld [vmem:[%s252_s30] sm:$0xff]  ;;  %v1095_v4 = vld [vmem:[%s1091_s10 + $0x58] sm:$0xff]  ;;  %v1105_v6 = vld [vmem:[%s1091_s10 + $0x68] sm:$0xff]  ;;  %vm765_vm10 = vcmask 1046534   ;;  %vm768_vm11 = vcmask 1047559   ;;  %s851_s29 = sld [smem:[#allocation2]] }
  0x10   : > { %959 = vmatpush.xpose.msk.msrb.mxu3 %vm269_vm1, %v1070_v0  ;;  %923 = vmatmul.msk.f32.vlgmr.msra.gmra.mxu0 %vm269_vm1, %v260_v3  ;;  %v1100_v5 = vld [vmem:[%s1091_s10 + $0x60] sm:$0xff]  ;;  %v1110_v7 = vld [vmem:[%s1091_s10 + $0x70] sm:$0xff]  ;;  %v1115_v8 = vld [vmem:[%s1091_s10 + $0x78] sm:$0xff] }
  0x11   : > { %925 = vmatpush.xpose.msk.msra.mxu1 %vm300_vm2, %v1120_v9  ;;  %v504_v16 = vld [vmem:[%s1091_s10 + $0x18] sm:$0xff]  ;;  %v505_v19 = vld [vmem:[%s1091_s10 + $0x20] sm:$0xff]  ;;  %v506_v21 = vld [vmem:[%s1091_s10 + $0x28] sm:$0xff] }
  0x12   : > { %v507_v22 = vld [vmem:[%s1091_s10 + $0x30] sm:$0xff]  ;;  %v508_v24 = vld [vmem:[%s1091_s10 + $0x38] sm:$0xff]  ;;  %v1163_v25 = vld [vmem:[%s1091_s10 + $0x40] sm:$0xff]  ;;  %v784_v46 = vmul.f32 %v504_v16, %v504_v16  ;;  %v785_v48 = vmul.f32 %v505_v19, %v505_v19  ;;  %v786_v51 = vmul.f32 %v506_v21, %v506_v21 }
  0x13   : > { %v1168_v26 = vld [vmem:[%s1091_s10 + $0x48] sm:$0xff]  ;;  %v1173_v27 = vld [vmem:[%s1091_s10 + $0x50] sm:$0xff]  ;;  %v501_v36 = vld [vmem:[%s1091_s10] sm:$0xff]  ;;  %v787_v55 = vmul.f32 %v507_v22, %v507_v22  ;;  %v788_v58 = vmul.f32 %v508_v24, %v508_v24 }
  0x14   : > { %v502_v37 = vld [vmem:[%s1091_s10 + $0x8] sm:$0xff]  ;;  %v781_v38 = vmul.f32 %v501_v36, %v501_v36  ;;  %v503_v47 = vld [vmem:[%s1091_s10 + $0x10] sm:$0xff]  ;;  %v802_v50 = vsel %vm269_vm1, %v784_v46, 0.0  ;;  %v804_v54 = vsel %vm269_vm1, %v785_v48, 0.0  ;;  %v806_v57 = vsel %vm269_vm1, %v786_v51, 0.0 }
  0x15   : > { %957 = vmatpush.xpose.msk.msrb.mxu1 %vm269_vm1, %v1070_v0  ;;  %v782_v39 = vmul.f32 %v502_v37, %v502_v37  ;;  %v783_v49 = vmul.f32 %v503_v47, %v503_v47  ;;  %v808_v60 = vsel %vm269_vm1, %v787_v55, 0.0  ;;  %v810_v62 = vsel %vm269_vm1, %v788_v58, 0.0 }
  0x16   : > { %v797_v40 = vsel %vm269_vm1, %v781_v38, 0.0 }
  0x17   : > { %946 = vmatmul.msk.f32.vlgmr.msrb.gmra.mxu3 %vm269_vm1, %v1095_v4  ;;  %v798_v41 = vsel %vm269_vm1, %v782_v39, 0.0  ;;  %v800_v52 = vsel %vm269_vm1, %v783_v49, 0.0 }
  0x18   : > { %v799_v42 = vadd.f32 %v798_v41, %v797_v40  ;;  %v791_v40 = vmul.f32 %v1173_v27, %v1173_v27 }
  0x1a   : > { %v801_v53 = vadd.f32 %v800_v52, %v799_v42  ;;  %v792_v42 = vmul.f32 %v1095_v4, %v1095_v4 }
  0x1c   : > { %v803_v56 = vadd.f32 %v802_v50, %v801_v53 }
  0x1e   : > { %v805_v59 = vadd.f32 %v804_v54, %v803_v56 }
  0x1f   : > { %947 = vmatmul.msk.f32.gmra.mxu3 %vm269_vm1, %v1100_v5 }
  0x20   : > { %v807_v61 = vadd.f32 %v806_v57, %v805_v59 }
  0x22   : > { %v809_v63 = vadd.f32 %v808_v60, %v807_v61 }
  0x27   : > { %948 = vmatmul.msk.f32.gmra.mxu3 %vm269_vm1, %v1105_v6 }
  0x2f   : > { %949 = vmatmul.msk.f32.gmra.mxu3 %vm269_vm1, %v1110_v7 }
  0x37   : > { %950 = vmatmul.msk.f32.gmra.mxu3 %vm269_vm1, %v1115_v8 }
  0x38   : > { %408 = vxpose.xlu0.b32.start [1/2] (short) (narrow) %v1120_v9, 8 }
  0x40   : > { %409 = vxpose.xlu0.b32.end [2/2] (short) (narrow) %v1128_v10, 8 }
  0x82   : > { %v348_v11 = vpop.xlane.xlu0 %347 }
  0x83   : > { %927 = vmatpush.msk.msra.mxu2 %vm353_vm3, %v348_v11 }
  0x85   : > { %457 = vmatpush.msrb.mxu2 %v1128_v10 }
  0x87   : > { %458 = vmatpush.msrb.mxu2 %v1120_v9 }
  0x8d   : > { %v293_v13 = vpop.f32.mrf.mxu0 }
  0x8e   : > { %v294_v14 = vadd.f32 %v990_v12, %v293_v13 }
  0x90   : > { %992 = vtanh.f32 %v294_v14 }
  0x92   : > { %v405_v43 = vpop.f32.mrf.mxu3 }
  0x96   : > { %v993_v15 = vpop.eup %992 }
  0x97   : > { %926 = vmatmul.msk.f32.vlgmr.msra.gmra.mxu1 %vm300_vm2, %v993_v15  ;;  %v342_v17 = vmul.f32 %v993_v15, %v993_v15 }
  0x99   : > { %v1146_v18 = vsub.f32 1.0, %v342_v17 }
  0x9b   : > { %v349_v20 = vmul.f32 %v1146_v18, %v1146_v18 }
  0x9d   : > { %928 = vmatmul.msk.f32.vlgmr.msra.gmra.mxu2 %vm300_vm2, %v349_v20 }
  0x9e   : > { %958 = vmatpush.xpose.msk.msra.mxu2 %vm269_vm1, %v1070_v0 }
  0x9f   : > { %938 = vmatmul.msk.f32.vlgmr.msrb.gmra.mxu1 %vm269_vm1, %v504_v16 }
  0xa7   : > { %939 = vmatmul.msk.f32.gmra.mxu1 %vm269_vm1, %v505_v19 }
  0xaf   : > { %940 = vmatmul.msk.f32.gmra.mxu1 %vm269_vm1, %v506_v21 }
  0xb7   : > { %941 = vmatmul.msk.f32.gmra.mxu1 %vm269_vm1, %v507_v22 }
  0xdc   : > { %v424_v23 = vpop.trf.xlu0 }
  0xdd   : > { %931 = vmatmul.msk.f32.vlgmr.msrb.gmra.mxu2 %vm269_vm1, %v424_v23  ;;  %v615_v23 = vpop.f32.mrf.mxu3 }
  0xde   : > { %v641_v58 = vmul.f32 %v615_v23, %v1128_v10 }
  0xe5   : > { %942 = vmatmul.msk.f32.vlgmr.msra.gmra.mxu2 %vm269_vm1, %v508_v24 }
  0xed   : > { %943 = vmatmul.msk.f32.gmra.mxu2 %vm269_vm1, %v1163_v25 }
  0xf5   : > { %944 = vmatmul.msk.f32.gmra.mxu2 %vm269_vm1, %v1168_v26 }
  0xfd   : > { %945 = vmatmul.msk.f32.gmra.mxu2 %vm269_vm1, %v1173_v27  ;;  %v816_v27 = vsel %vm269_vm1, %v791_v40, 0.0 }
 0x114   : > { %v327_v29 = vpop.f32.mrf.mxu1 }
 0x115   : > { %v328_v30 = vadd.f32 %v991_v28, %v327_v29  ;;  %v618_v29 = vpop.f32.mrf.mxu3 }
 0x116   : > { %v642_v59 = vmul.f32 %v618_v29, %v1120_v9 }
 0x117   : > { %v330_v31 = vsub.f32 %v328_v30, %v260_v3 }
 0x119   : > { %v331_v32 = vmul.f32 %v330_v31, %v330_v31 }
 0x11b   : > { %v332_v33 = vsel %vm269_vm1, %v331_v32, 0.0 }
 0x11c   : > { %333 = vadd.xlane.f32.xlu1 %v332_v33  ;;  %v1200_v24 = vpop.f32.mrf.mxu1 }
 0x11d   : > { %v621_v32 = vpop.f32.mrf.mxu3 }
 0x11e   : > { %v643_v60 = vmul.f32 %v621_v32, %v1128_v10 }
 0x120   : > { %v374_v34 = vpop.f32.mrf.mxu2 }
 0x121   : > { %v378_v35 = vsel %vm377_vm4, %v374_v34, 0.0 }
 0x124   : > { %379 = vadd.xlane.f32.xlu1 %v378_v35  ;;  %v594_v30 = vpop.f32.mrf.mxu1  ;;  %v789_v35 = vmul.f32 %v1163_v25, %v1163_v25 }
 0x126   : > { %v812_v39 = vsel %vm269_vm1, %v789_v35, 0.0 }
 0x12c   : > { %v597_v33 = vpop.f32.mrf.mxu1 }
 0x12d   : > { %v635_v48 = vmul.f32 %v597_v33, %v1128_v10 }
 0x160   : > { %v460_v44 = vpop.f32.mrf.mxu2 }
 0x161   : > { %v463_v45 = vmul.f32 %v460_v44, %v405_v43  ;;  %v793_v43 = vmul.f32 %v1100_v5, %v1100_v5  ;;  %v818_v5 = vsel %vm269_vm1, %v792_v42, 0.0 }
 0x163   : > { %932 = vmatpush.msk.msrb.mxu0 %vm353_vm3, %v463_v45  ;;  %v600_v45 = vpop.f32.mrf.mxu1  ;;  %v820_v50 = vsel %vm269_vm1, %v793_v43, 0.0 }
 0x164   : > { %933 = vmatmul.msk.f32.vlgmr.msrb.gmra.mxu0 %vm300_vm2, %v1146_v18  ;;  %v636_v51 = vmul.f32 %v600_v45, %v1120_v9 }
 0x165   : > { %934 = vmatpush.xpose.msk.msra.mxu0 %vm269_vm1, %v1070_v0  ;;  %v811_v0 = vadd.f32 %v810_v62, %v809_v63 }
 0x167   : > { %v813_v46 = vadd.f32 %v812_v39, %v811_v0  ;;  %v665_v0 = vsel %vm300_vm2, %v635_v48, 0.0 }
 0x168   : > { %v603_v28 = vpop.f32.mrf.mxu2 }
 0x169   : > { %v637_v52 = vmul.f32 %v603_v28, %v1128_v10 }
 0x16c   : > { %935 = vmatmul.msk.f32.vlgmr.msra.gmra.mxu0 %vm269_vm1, %v501_v36  ;;  %v624_v36 = vpop.f32.mrf.mxu3 }
 0x16d   : > { %v644_v62 = vmul.f32 %v624_v36, %v1120_v9 }
 0x170   : > { %v606_v31 = vpop.f32.mrf.mxu2 }
 0x171   : > { %v638_v54 = vmul.f32 %v606_v31, %v1120_v9 }
 0x174   : > { %936 = vmatmul.msk.f32.gmra.mxu0 %vm269_vm1, %v502_v37  ;;  %v790_v37 = vmul.f32 %v1168_v26, %v1168_v26  ;;  %v794_v26 = vmul.f32 %v1105_v6, %v1105_v6  ;;  %v627_v53 = vpop.f32.mrf.mxu3 }
 0x176   : > { %v814_v25 = vsel %vm269_vm1, %v790_v37, 0.0  ;;  %v822_v6 = vsel %vm269_vm1, %v794_v26, 0.0 }
 0x177   : > { %v815_v49 = vadd.f32 %v814_v25, %v813_v46 }
 0x178   : > { %v609_v34 = vpop.f32.mrf.mxu2 }
 0x179   : > { %v639_v55 = vmul.f32 %v609_v34, %v1128_v10  ;;  %v817_v57 = vadd.f32 %v816_v27, %v815_v49 }
 0x17c   : > { %937 = vmatmul.msk.f32.gmra.mxu0 %vm269_vm1, %v503_v47  ;;  %v634_v47 = vmul.f32 %v594_v30, %v1120_v9 }
 0x17e   : > { %v664_v63 = vsel %vm300_vm2, %v634_v47, 0.0 }
 0x180   : > { %v612_v4 = vpop.f32.mrf.mxu2 }
 0x181   : > { %v640_v61 = vmul.f32 %v612_v4, %v1120_v9  ;;  %v633_v4 = vmul.f32 %v1200_v24, %v1128_v10 }
 0x18f   : > { %v334_v1 = vpop.xlane.xlu1 %333 }
 0x190   : > { %v335_v2 = vrot.slane %v334_v1, 4 }
 0x192   : > { %v336_v3 = vadd.f32 %v335_v2, %v334_v1  ;;  %v819_v1 = vadd.f32 %v818_v5, %v817_v57  ;;  %v795_v2 = vmul.f32 %v1110_v7, %v1110_v7  ;;  %v691_v7 = vsel %vm300_vm2, %v640_v61, 0.0 }
 0x194   : > { %v337_v11 = vrot.slane %v336_v3, 2  ;;  %v824_v31 = vsel %vm269_vm1, %v795_v2, 0.0 }
 0x196   : > { %v338_v12 = vadd.f32 %v337_v11, %v336_v3  ;;  %v645_v3 = vmul.f32 %v627_v53, %v1128_v10  ;;  %v673_v11 = vsel %vm300_vm2, %v636_v51, 0.0 }
 0x197   : > { %v380_v13 = vpop.xlane.xlu1 %379 }
 0x198   : > { %v381_v14 = vrot.slane %v380_v13, 4  ;;  %v339_v15 = vrot.slane %v338_v12, 1 }
 0x19a   : > { %v382_v16 = vadd.f32 %v381_v14, %v380_v13  ;;  %v340_v17 = vadd.f32 %v339_v15, %v338_v12  ;;  %v674_v12 = vsel %vm300_vm2, %v637_v52, 0.0  ;;  %v796_v13 = vmul.f32 %v1115_v8, %v1115_v8 }
 0x19b   : > { %v682_v14 = vsel %vm300_vm2, %v638_v54, 0.0  ;;  %v683_v15 = vsel %vm300_vm2, %v639_v55, 0.0  ;;  %v675_v23 = vadd.f32 %v674_v12, %v673_v11  ;;  %v710_v8 = vsel %vm300_vm2, %v645_v3, 0.0 }
 0x19c   : > { %v383_v19 = vrot.slane %v382_v16, 2  ;;  %960 = vpush %v340_v17  ;;  %v692_v17 = vsel %vm300_vm2, %v641_v58, 0.0  ;;  %v684_v29 = vadd.f32 %v683_v15, %v682_v14 }
 0x19d   : > { %v693_v32 = vadd.f32 %v692_v17, %v691_v7  ;;  %v676_v40 = vrot.slane %v675_v23, 4 }
 0x19e   : > { %v384_v20 = vadd.f32 %v383_v19, %v382_v16  ;;  %v821_v16 = vadd.f32 %v820_v50, %v819_v1  ;;  %v700_v19 = vsel %vm300_vm2, %v642_v59, 0.0  ;;  %v685_v42 = vrot.slane %v684_v29, 4 }
 0x19f   : > { %v677_v47 = vadd.f32 %v676_v40, %v675_v23 }
 0x1a0   : > { %v385_v21 = vrot.slane %v384_v20, 1  ;;  %v823_v28 = vadd.f32 %v822_v6, %v821_v16  ;;  %v686_v49 = vadd.f32 %v685_v42, %v684_v29  ;;  %v720_v29 = vrot.slane %v1146_v18, 3 }
 0x1a1   : > { %v678_v55 = vrot.slane %v677_v47, 2 }
 0x1a2   : > { %v386_v22 = vadd.f32 %v385_v21, %v384_v20  ;;  %v666_v20 = vadd.f32 %v665_v0, %v664_v63  ;;  %v701_v21 = vsel %vm300_vm2, %v643_v60, 0.0  ;;  %v825_v34 = vadd.f32 %v824_v31, %v823_v28 }
 0x1a3   : > { %v702_v35 = vadd.f32 %v701_v21, %v700_v19  ;;  %v687_v57 = vrot.slane %v686_v49, 2  ;;  %v679_v63 = vadd.f32 %v678_v55, %v677_v47  ;;  %v721_v31 = vrot.slane %v1146_v18, 4 }
 0x1a4   : > { %962 = vpush %v386_v22  ;;  %v709_v22 = vsel %vm300_vm2, %v644_v62, 0.0  ;;  %v667_v36 = vrot.slane %v666_v20, 4 }
 0x1a5   : > { %v711_v39 = vadd.f32 %v710_v8, %v709_v22  ;;  %v703_v45 = vrot.slane %v702_v35, 4  ;;  %v688_v1 = vadd.f32 %v687_v57, %v686_v49  ;;  %v680_v14 = vrot.slane %v679_v63, 1 }
 0x1a6   : > { %v668_v46 = vadd.f32 %v667_v36, %v666_v20  ;;  %v719_v8 = vrot.slane %v1146_v18, 2 }
 0x1a7   : > { %v712_v27 = vrot.slane %v711_v39, 4  ;;  %v704_v52 = vadd.f32 %v703_v45, %v702_v35  ;;  %v689_v16 = vrot.slane %v688_v1, 1  ;;  %v681_v23 = vadd.f32 %v680_v14, %v679_v63 }
 0x1a8   : > { %v669_v6 = vrot.slane %v668_v46, 2  ;;  %v718_v35 = vrot.slane %v1146_v18, 1 }
 0x1a9   : > { %v713_v54 = vadd.f32 %v712_v27, %v711_v39  ;;  %v705_v62 = vrot.slane %v704_v52, 2  ;;  %v723_v39 = vrot.slane %v1146_v18, 6  ;;  %v736_v40 = vmul.f32 %v720_v29, %v681_v23 }
 0x1ab   : > { %v714_v24 = vrot.slane %v713_v54, 2  ;;  %v755_v47 = vrot.slane %v736_v40, 5 }
 0x1cd   : > { %s961_s20 = spop %960 }
 0x1ce   : > { %s840_s25 = smul.f32 0.001953125, %s961_s20 }
 0x1d5   : > { %s963_s23 = spop %962 }
 0x1d6   : > { %s841_s28 = smul.f32 0.03125, %s963_s23 }
 0x1d8   : > { %s842_s9 = sadd.f32 %s841_s28, %s840_s25 }
 0x1e1   : > { %v487_v38 = vpop.f32.mrf.mxu0 }
 0x1e2   : > { %v490_v41 = vmul.f32 %v487_v38, %v1146_v18  ;;  %v826_v38 = vsel %vm269_vm1, %v796_v13, 0.0  ;;  %v715_v13 = vadd.f32 %v714_v24, %v713_v54 }
 0x1e4   : > { %v491_v44 = vsel %vm300_vm2, %v490_v41, 0.0  ;;  %v827_v41 = vadd.f32 %v826_v38, %v825_v34  ;;  %v716_v22 = vrot.slane %v715_v13, 1  ;;  %v722_v38 = vrot.slane %v1146_v18, 5 }
 0x1e5   : > { %492 = vadd.xlane.f32.xlu2 %v491_v44  ;;  %v694_v44 = vrot.slane %v693_v32, 4 }
 0x1e6   : > { %828 = vadd.xlane.f32.xlu1 %v827_v41  ;;  %v717_v42 = vadd.f32 %v716_v22, %v715_v13 }
 0x1e7   : > { %v695_v5 = vadd.f32 %v694_v44, %v693_v32 }
 0x1e9   : > { %v582_v56 = vpop.f32.mrf.mxu0  ;;  %v696_v59 = vrot.slane %v695_v5, 2 }
 0x1ea   : > { %v630_v30 = vmul.f32 %v582_v56, %v1120_v9  ;;  %v656_v56 = vsel %vm300_vm2, %v633_v4, 0.0 }
 0x1eb   : > { %v697_v2 = vadd.f32 %v696_v59, %v695_v5 }
 0x1ec   : > { %v646_v43 = vsel %vm300_vm2, %v630_v30, 0.0  ;;  %v690_v30 = vadd.f32 %v689_v16, %v688_v1 }
 0x1ed   : > { %v698_v17 = vrot.slane %v697_v2, 1 }
 0x1ef   : > { %v699_v32 = vadd.f32 %v698_v17, %v697_v2 }
 0x1f1   : > { %v585_v33 = vpop.f32.mrf.mxu0  ;;  %v738_v45 = vmul.f32 %v722_v38, %v699_v32 }
 0x1f2   : > { %v631_v37 = vmul.f32 %v585_v33, %v1128_v10  ;;  %v670_v10 = vadd.f32 %v669_v6, %v668_v46 }
 0x1f4   : > { %v647_v25 = vsel %vm300_vm2, %v631_v37, 0.0  ;;  %v671_v12 = vrot.slane %v670_v10, 1 }
 0x1f5   : > { %v648_v26 = vadd.f32 %v647_v25, %v646_v43  ;;  %v724_v43 = vrot.slane %v1146_v18, 7  ;;  %v737_v25 = vmul.f32 %v721_v31, %v690_v30 }
 0x1f6   : > { %v672_v21 = vadd.f32 %v671_v12, %v670_v10 }
 0x1f7   : > { %v649_v48 = vrot.slane %v648_v26, 4  ;;  %v758_v49 = vrot.slane %v737_v25, 4 }
 0x1f8   : > { %v735_v37 = vmul.f32 %v719_v8, %v672_v21 }
 0x1f9   : > { %v650_v50 = vadd.f32 %v649_v48, %v648_v26  ;;  %v588_v51 = vpop.f32.mrf.mxu0  ;;  %v740_v48 = vmul.f32 %v724_v43, %v717_v42 }
 0x1fa   : > { %v632_v53 = vmul.f32 %v588_v51, %v1120_v9  ;;  %v706_v9 = vadd.f32 %v705_v62, %v704_v52  ;;  %v752_v46 = vrot.slane %v735_v37, 6  ;;  %v761_v51 = vrot.slane %v738_v45, 3 }
 0x1fb   : > { %v651_v60 = vrot.slane %v650_v50, 2 }
 0x1fc   : > { %v655_v58 = vsel %vm300_vm2, %v632_v53, 0.0  ;;  %v707_v7 = vrot.slane %v706_v9, 1  ;;  %v767_v53 = vrot.slane %v740_v48, 1 }
 0x1fd   : > { %v657_v61 = vadd.f32 %v656_v56, %v655_v58  ;;  %v652_v3 = vadd.f32 %v651_v60, %v650_v50 }
 0x1fe   : > { %v708_v36 = vadd.f32 %v707_v7, %v706_v9 }
 0x1ff   : > { %v658_v0 = vrot.slane %v657_v61, 4  ;;  %v653_v19 = vrot.slane %v652_v3, 1 }
 0x200   : > { %v739_v27 = vmul.f32 %v723_v39, %v708_v36 }
 0x201   : > { %v659_v11 = vadd.f32 %v658_v0, %v657_v61  ;;  %v654_v33 = vadd.f32 %v653_v19, %v652_v3 }
 0x202   : > { %v764_v6 = vrot.slane %v739_v27, 2 }
 0x203   : > { %v660_v15 = vrot.slane %v659_v11, 2  ;;  %v733_v44 = vmul.f32 %v654_v33, %v1146_v18 }
 0x205   : > { %v661_v20 = vadd.f32 %v660_v15, %v659_v11 }
 0x207   : > { %v662_v28 = vrot.slane %v661_v20, 1 }
 0x209   : > { %v663_v34 = vadd.f32 %v662_v28, %v661_v20 }
 0x20b   : > { %v734_v41 = vmul.f32 %v718_v35, %v663_v34 }
 0x20d   : > { %v749_v26 = vrot.slane %v734_v41, 7 }
 0x20f   : > { %v751_v4 = vsel %vm750_vm5, %v749_v26, %v733_v44 }
 0x210   : > { %v754_v5 = vsel %vm753_vm6, %v752_v46, %v751_v4 }
 0x211   : > { %v757_v50 = vsel %vm756_vm7, %v755_v47, %v754_v5 }
 0x212   : > { %v760_v52 = vsel %vm759_vm8, %v758_v49, %v757_v50 }
 0x213   : > { %v763_v18 = vsel %vm762_vm9, %v761_v51, %v760_v52 }
 0x214   : > { %v766_v54 = vsel %vm765_vm10, %v764_v6, %v763_v18 }
 0x215   : > { %v769_v55 = vsel %vm768_vm11, %v767_v53, %v766_v54 }
 0x216   : > { %v771_v56 = vsel %vm300_vm2, %v769_v55, 0.0 }
 0x217   : > { %772 = vadd.xlane.f32.xlu2 %v771_v56 }
 0x258   : > { %v493_v57 = vpop.xlane.xlu2 %492 }
 0x259   : > { %v494_v58 = vrot.slane %v493_v57, 4  ;;  %v829_v24 = vpop.xlane.xlu1 %828 }
 0x25a   : > { %v830_v63 = vrot.slane %v829_v24, 4 }
 0x25b   : > { %v495_v59 = vadd.f32 %v494_v58, %v493_v57 }
 0x25c   : > { %v831_v0 = vadd.f32 %v830_v63, %v829_v24 }
 0x25d   : > { %v496_v60 = vrot.slane %v495_v59, 2 }
 0x25e   : > { %v832_v2 = vrot.slane %v831_v0, 2 }
 0x25f   : > { %v497_v61 = vadd.f32 %v496_v60, %v495_v59 }
 0x260   : > { %v833_v9 = vadd.f32 %v832_v2, %v831_v0 }
 0x261   : > { %v498_v62 = vrot.slane %v497_v61, 1 }
 0x262   : > { %v834_v14 = vrot.slane %v833_v9, 1 }
 0x263   : > { %v499_v10 = vadd.f32 %v498_v62, %v497_v61 }
 0x264   : > { %v835_v17 = vadd.f32 %v834_v14, %v833_v9 }
 0x265   : > { %964 = vpush %v499_v10 }
 0x28a   : > { %v773_v1 = vpop.xlane.xlu2 %772 }
 0x28b   : > { %v774_v3 = vrot.slane %v773_v1, 4 }
 0x28d   : > { %v775_v11 = vadd.f32 %v774_v3, %v773_v1 }
 0x28f   : > { %v776_v12 = vrot.slane %v775_v11, 2 }
 0x291   : > { %v777_v13 = vadd.f32 %v776_v12, %v775_v11 }
 0x293   : > { %v778_v15 = vrot.slane %v777_v13, 1 }
 0x295   : > { %v779_v16 = vadd.f32 %v778_v15, %v777_v13 }
 0x296   : > { %s965_s24 = spop %964 }
 0x297   : > { %966 = vpush %v779_v16 }
 0x298   : > { %968 = vpush %v835_v17 }
 0x2c8   : > { %s967_s26 = spop %966 }
 0x2c9   : > { %s837_s27 = smul.f32 2.0, %s967_s26  ;;  %s969_s7 = spop %968 }
 0x2cb   : > { %s838_s30 = ssub.f32 %s965_s24, %s837_s27 }
 0x2cd   : > { %s839_s8 = sadd.f32 %s969_s7, %s838_s30 }
 0x2cf   : > { %s843_s10 = smul.f32 0.03125, %s839_s8 }
 0x2d1   : > { %s844_s14 = sadd.f32 %s843_s10, %s842_s9 }
 0x2d3   : > { %s852_s15 = sadd.f32 %s851_s29, %s844_s14 }
 0x2d5   : > { %854 = sst [smem:[#allocation2]] %s852_s15 }
 0x2d6   : > { %973 = dma.smem_to_hbm (%p977_p6), %s1021_s16, 16, %s862_s13, [#allocation3]  }
 0x2d7   : > { %1013 = dma.done.wait (%p977_p6), [#allocation3], 16  }
 0x2d8   : > { %1015 = vsyncadd (%p977_p6), [#allocation3], 4294967280 }
 0x2d9   : > { %870 = sfence }
 0x2da PF: > { %s17_s21 = sadd.s32 1, %s1018_s21  }
 0x2db   : > { %p14_p7 = scmp.ge.s32.totalorder %s17_s21, 6  }
 0x2dd   :  { %16 = sbr.rel (!%p14_p7) target bundleno = 1 (0x1), region = 80 }
 0x2e2   :  { %876 = vsyncpa [#allocation3], 1 }
 0x2e3   :  { %878 = vsyncpa [#allocation3 + $0x1], 1 }

</bundles_post_ra>
